<compile_context>
chip_gen: v5e
topology: v5e:2x2
jax: 0.10.0
libtpu: 0.0.40
codegen_flags: <defaults>
</compile_context>

<pallas_src>
import numpy as np
import jax
import jax.numpy as jnp
from jax import lax
from jax.experimental import pallas as pl
from jax.experimental.pallas import tpu as pltpu


def _round_up(x, m):
    return ((x + m - 1) // m) * m


# "NT" dims: contract lhs dim 1 with rhs dim 1 (i.e. lhs @ rhs.T) — the same
# pattern the TPU flash-attention kernels use for q @ k^T.
_NT_DIMS = (((1,), (1,)), ((), ()))


def actor_kernel(x_ref, w1_ref, b1_ref, w2_ref, b2_ref, w3t_ref, b3t_ref, out_ref):
    # fc1 + ReLU  (bf16 MXU inputs, f32 accumulation, f32 bias/activation path)
    x = x_ref[...].astype(jnp.bfloat16)                                  # (TB, S)
    h1 = jnp.dot(x, w1_ref[...], preferred_element_type=jnp.float32)
    h1 = jnp.maximum(h1 + b1_ref[...], 0.0)                              # (TB, H1p)
    # fc2 + ReLU
    h2 = jnp.dot(h1.astype(jnp.bfloat16), w2_ref[...],
                 preferred_element_type=jnp.float32)
    h2 = jnp.maximum(h2 + b2_ref[...], 0.0)                              # (TB, H2p)
    # fc3 + tanh, computed transposed so the HBM output is a tiny lane-dense
    # (A8, TB) tile (batch on the lane axis, only 8 sublanes tall).
    h3t = lax.dot_general(w3t_ref[...], h2.astype(jnp.bfloat16),
                          dimension_numbers=_NT_DIMS,
                          preferred_element_type=jnp.float32)            # (A8, TB)
    out_ref[...] = jnp.tanh(h3t + b3t_ref[...]).astype(out_ref.dtype)


def prepare_actor_params(params):
    """One-time prep: pad hidden lane dims to multiples of 128, keep fc3 in its
    native [out, in] orientation padded to 8 sublanes, cast weights to bf16.

    Zero padding is exact for this network: padded hidden columns stay 0
    through relu(0 + 0), padded K-rows of the next weight are 0 (contribute
    nothing), padded output rows are tanh(0) and sliced off.
    """
    w1, b1 = params["w1"], params["b1"]
    w2, b2 = params["w2"], params["b2"]
    w3, b3 = params["w3"], params["b3"]
    S, H1 = w1.shape
    _, H2 = w2.shape
    _, A = w3.shape
    H1p, H2p = _round_up(H1, 128), _round_up(H2, 128)
    A8 = _round_up(A, 8)

    def pad2(a, rows, cols):
        return jnp.pad(a, ((0, rows - a.shape[0]), (0, cols - a.shape[1])))

    return {
        "w1": pad2(w1, S, H1p).astype(jnp.bfloat16),                      # (S, H1p)
        "b1": pad2(jnp.reshape(b1, (1, H1)), 1, H1p).astype(jnp.float32),  # (1, H1p)
        "w2": pad2(w2, H1p, H2p).astype(jnp.bfloat16),                    # (H1p, H2p)
        "b2": pad2(jnp.reshape(b2, (1, H2)), 1, H2p).astype(jnp.float32),  # (1, H2p)
        "w3t": pad2(w3.T, A8, H2p).astype(jnp.bfloat16),                  # (A8, H2p)
        "b3t": pad2(jnp.reshape(b3, (A, 1)), A8, 1).astype(jnp.float32),   # (A8, 1)
        "action_size": A,
    }


def actor_forward(state, prepped, *, block_b=1024):
    """state: [B, state_size] f32  ->  actions: [B, action_size] f32."""
    w1, b1 = prepped["w1"], prepped["b1"]
    w2, b2 = prepped["w2"], prepped["b2"]
    w3t, b3t = prepped["w3t"], prepped["b3t"]
    A = prepped["action_size"]
    A8 = w3t.shape[0]

    B, S = state.shape
    H1p, H2p = w1.shape[1], w2.shape[1]

    # ---- Batch tile selection --------------------------------------------
    # Cap at 1024 rows: f32 intermediates + resident weights stay within every
    # generation's default scoped VMEM (incl. v5e's 16 MiB), so no explicit
    # vmem_limit_bytes is required.
    block_b = max(128, min(_round_up(block_b, 128), 1024))
    TB = min(block_b, _round_up(B, 8))
    if B > 256:
        # Aim for >= 2 grid steps so the "parallel" batch axis can shard
        # across both TensorCores on v7x; keep TB a multiple of 128 so the
        # (A8, TB) output block stays lane-aligned.
        TB = _round_up(min(TB, _round_up(pl.cdiv(B, 2), 128)), 128)
    B_pad = _round_up(B, TB)
    if B_pad != B:
        # Only pads when B is ragged w.r.t. the tile (common case: no pad).
        state = jnp.pad(state, ((0, B_pad - B), (0, 0)))
    grid = (B_pad // TB,)

    # Constant index_map => block index never changes => Pallas keeps these
    # operands VMEM-resident across all grid steps (weights DMA'd once).
    const = lambda shape: pl.BlockSpec(shape, lambda i: (0, 0))

    weight_bytes = ((w1.size + w2.size + w3t.size) * 2
                    + (b1.size + b2.size + b3t.size) * 4)
    cost = pl.CostEstimate(
        flops=2 * B_pad * (S * H1p + H1p * H2p + H2p * A8),
        transcendentals=B_pad * A8,
        bytes_accessed=B_pad * S * 4 + weight_bytes + B_pad * A8 * 4,
    )

    out_t = pl.pallas_call(
        actor_kernel,
        out_shape=jax.ShapeDtypeStruct((A8, B_pad), jnp.float32),
        grid=grid,
        in_specs=[
            pl.BlockSpec((TB, S), lambda i: (i, 0)),     # state tile moves over B
            const(w1.shape), const(b1.shape),            # weights/biases: load once
            const(w2.shape), const(b2.shape),
            const(w3t.shape), const(b3t.shape),
        ],
        out_specs=pl.BlockSpec((A8, TB), lambda i: (0, i)),   # batch on lanes
        compiler_params=pltpu.CompilerParams(
            dimension_semantics=("parallel",)),
        cost_estimate=cost,
    )(state, w1, b1, w2, b2, w3t, b3t)

    # Tiny (A8, B_pad) slab -> (B, action_size).
    return out_t[:A, :B].T


def init_actor_params(key, state_size, action_size, fc1_units=400, fc2_units=300):
    """Deterministic init mirroring the PyTorch module's reset_parameters().

    Note: the original hidden_init uses weight.size(0) (= out_features) as
    "fan_in"; we reproduce that exact (quirky) semantics, and fc2 also uses
    hidden_init(fc1) as in the reference code.
    """
    k1, k2, k3, kb1, kb2, kb3 = jax.random.split(key, 6)
    lim1 = 1.0 / np.sqrt(fc1_units)   # hidden_init(fc1) -> size(0)=400
    lim2 = lim1                        # fc2 also uses hidden_init(fc1)
    lim3 = 0.003
    # PyTorch Linear: weight [out, in]; we store w1/w2/w3 transposed [in, out]
    # (prepare_actor_params re-transposes fc3 back to its native orientation).
    w1 = jax.random.uniform(k1, (state_size, fc1_units), jnp.float32, -lim1, lim1)
    w2 = jax.random.uniform(k2, (fc1_units, fc2_units), jnp.float32, -lim2, lim2)
    w3 = jax.random.uniform(k3, (fc2_units, action_size), jnp.float32, -lim3, lim3)
    # Biases keep PyTorch's default Linear bias init: U(-1/sqrt(fan_in), ...).
    b1 = jax.random.uniform(kb1, (1, fc1_units), jnp.float32,
                            -1.0 / np.sqrt(state_size), 1.0 / np.sqrt(state_size))
    b2 = jax.random.uniform(kb2, (1, fc2_units), jnp.float32,
                            -1.0 / np.sqrt(fc1_units), 1.0 / np.sqrt(fc1_units))
    b3 = jax.random.uniform(kb3, (1, action_size), jnp.float32,
                            -1.0 / np.sqrt(fc2_units), 1.0 / np.sqrt(fc2_units))
    return {"w1": w1, "b1": b1, "w2": w2, "b2": b2, "w3": w3, "b3": b3}


def actor_reference(state, p):
    """Pure f32 reference of the original module's forward."""
    h1 = jnp.maximum(state @ p["w1"] + p["b1"], 0.0)
    h2 = jnp.maximum(h1 @ p["w2"] + p["b2"], 0.0)
    return jnp.tanh(h2 @ p["w3"] + p["b3"])


if __name__ == "__main__":
    B, state_size, action_size = 8, 33, 4
    key = jax.random.PRNGKey(0)
    k_params, k_state, k_state2 = jax.random.split(key, 3)
    params = init_actor_params(k_params, state_size, action_size)
    prepped = prepare_actor_params(params)

    # Small inference-style batch (single tile, no padding).
    state = jax.random.normal(k_state, (B, state_size), jnp.float32)
    out = jax.block_until_ready(actor_forward(state, prepped))
    ref = actor_reference(state, params)
    # bf16 weights / bf16 MXU inputs with f32 accumulation -> loosened tolerance.
    np.testing.assert_allclose(np.asarray(out), np.asarray(ref), rtol=2e-2, atol=2e-2)
    assert out.shape == (B, action_size)

    # Larger ragged batch: exercises the multi-step grid (weights stay
    # VMEM-resident across steps), >= 2 "parallel" steps, and batch padding.
    B2 = 300
    state2 = jax.random.normal(k_state2, (B2, state_size), jnp.float32)
    out2 = jax.block_until_ready(actor_forward(state2, prepped, block_b=128))
    ref2 = actor_reference(state2, params)
    np.testing.assert_allclose(np.asarray(out2), np.asarray(ref2), rtol=2e-2, atol=2e-2)
    assert out2.shape == (B2, action_size)

    print("KERNEL_OK")
</pallas_src>

<mosaic_0001>
module attributes {stable_mosaic.version = 11 : i64} {
  func.func @actor_kernel(%arg0: i32, %arg1: memref<8x33xf32, #tpu.memory_space<vmem>>, %arg2: memref<33x512xbf16, #tpu.memory_space<vmem>>, %arg3: memref<1x512xf32, #tpu.memory_space<vmem>>, %arg4: memref<512x384xbf16, #tpu.memory_space<vmem>>, %arg5: memref<1x384xf32, #tpu.memory_space<vmem>>, %arg6: memref<8x384xbf16, #tpu.memory_space<vmem>>, %arg7: memref<8x1xf32, #tpu.memory_space<vmem>>, %arg8: memref<8x8xf32, #tpu.memory_space<vmem>>) attributes {dimension_semantics = [#tpu.dimension_semantics<parallel>], iteration_bounds = array<i64: 1>, scalar_prefetch = 0 : i64, scratch_operands = 0 : i64, tpu.core_type = #tpu.core_type<tc>, window_params = [{transform_indices = @transform_0, window_bounds = array<i64: 8, 33>}, {pipeline_mode = #tpu.pipeline_mode<synchronous>, transform_indices = @transform_1, window_bounds = array<i64: 33, 512>}, {pipeline_mode = #tpu.pipeline_mode<synchronous>, transform_indices = @transform_2, window_bounds = array<i64: 1, 512>}, {pipeline_mode = #tpu.pipeline_mode<synchronous>, transform_indices = @transform_3, window_bounds = array<i64: 512, 384>}, {pipeline_mode = #tpu.pipeline_mode<synchronous>, transform_indices = @transform_4, window_bounds = array<i64: 1, 384>}, {pipeline_mode = #tpu.pipeline_mode<synchronous>, transform_indices = @transform_5, window_bounds = array<i64: 8, 384>}, {pipeline_mode = #tpu.pipeline_mode<synchronous>, transform_indices = @transform_6, window_bounds = array<i64: 8, 1>}, {transform_indices = @transform_7, window_bounds = array<i64: 8, 8>}]} {
    %c0 = arith.constant 0 : index
    %c0_0 = arith.constant 0 : index
    %0 = vector.load %arg1[%c0, %c0_0] : memref<8x33xf32, #tpu.memory_space<vmem>>, vector<8x33xf32>
    %1 = arith.truncf %0 : vector<8x33xf32> to vector<8x33xbf16>
    %c0_1 = arith.constant 0 : index
    %c0_2 = arith.constant 0 : index
    %2 = vector.load %arg2[%c0_1, %c0_2] : memref<33x512xbf16, #tpu.memory_space<vmem>>, vector<33x512xbf16>
    %cst = arith.constant dense<0.000000e+00> : vector<8x512xf32>
    %3 = tpu.matmul %1, %2, %cst {dimension_numbers = #tpu.dot_dimension_numbers<[1], [0], [0], [1], [0, 0, 1, 1], [], []>} : vector<8x33xbf16>, vector<33x512xbf16>, vector<8x512xf32> -> vector<8x512xf32>
    %c0_3 = arith.constant 0 : index
    %c0_4 = arith.constant 0 : index
    %4 = vector.load %arg3[%c0_3, %c0_4] : memref<1x512xf32, #tpu.memory_space<vmem>>, vector<1x512xf32>
    %5 = vector.broadcast %4 : vector<1x512xf32> to vector<8x512xf32>
    %6 = arith.addf %3, %5 : vector<8x512xf32>
    %cst_5 = arith.constant 0.000000e+00 : f32
    %7 = vector.broadcast %cst_5 : f32 to vector<8x512xf32>
    %8 = arith.maximumf %6, %7 : vector<8x512xf32>
    %9 = arith.truncf %8 : vector<8x512xf32> to vector<8x512xbf16>
    %c0_6 = arith.constant 0 : index
    %c0_7 = arith.constant 0 : index
    %10 = vector.load %arg4[%c0_6, %c0_7] : memref<512x384xbf16, #tpu.memory_space<vmem>>, vector<512x384xbf16>
    %cst_8 = arith.constant dense<0.000000e+00> : vector<8x384xf32>
    %11 = tpu.matmul %9, %10, %cst_8 {dimension_numbers = #tpu.dot_dimension_numbers<[1], [0], [0], [1], [0, 0, 1, 1], [], []>} : vector<8x512xbf16>, vector<512x384xbf16>, vector<8x384xf32> -> vector<8x384xf32>
    %c0_9 = arith.constant 0 : index
    %c0_10 = arith.constant 0 : index
    %12 = vector.load %arg5[%c0_9, %c0_10] : memref<1x384xf32, #tpu.memory_space<vmem>>, vector<1x384xf32>
    %13 = vector.broadcast %12 : vector<1x384xf32> to vector<8x384xf32>
    %14 = arith.addf %11, %13 : vector<8x384xf32>
    %cst_11 = arith.constant 0.000000e+00 : f32
    %15 = vector.broadcast %cst_11 : f32 to vector<8x384xf32>
    %16 = arith.maximumf %14, %15 : vector<8x384xf32>
    %c0_12 = arith.constant 0 : index
    %c0_13 = arith.constant 0 : index
    %17 = vector.load %arg6[%c0_12, %c0_13] : memref<8x384xbf16, #tpu.memory_space<vmem>>, vector<8x384xbf16>
    %18 = arith.truncf %16 : vector<8x384xf32> to vector<8x384xbf16>
    %cst_14 = arith.constant dense<0.000000e+00> : vector<8x8xf32>
    %19 = tpu.matmul %17, %18, %cst_14 {dimension_numbers = #tpu.dot_dimension_numbers<[1], [1], [0], [0], [0, 0, 1, 0], [], []>} : vector<8x384xbf16>, vector<8x384xbf16>, vector<8x8xf32> -> vector<8x8xf32>
    %c0_15 = arith.constant 0 : index
    %c0_16 = arith.constant 0 : index
    %20 = vector.load %arg7[%c0_15, %c0_16] : memref<8x1xf32, #tpu.memory_space<vmem>>, vector<8x1xf32>
    %21 = vector.broadcast %20 : vector<8x1xf32> to vector<8x8xf32>
    %22 = arith.addf %19, %21 : vector<8x8xf32>
    %23 = math.tanh %22 : vector<8x8xf32>
    %c0_17 = arith.constant 0 : index
    %c0_18 = arith.constant 0 : index
    %24 = vector.load %arg8[%c0_17, %c0_18] : memref<8x8xf32, #tpu.memory_space<vmem>>, vector<8x8xf32>
    tpu.vector_store %arg8[%c0_17, %c0_18], %23 {strides = array<i32>} : memref<8x8xf32, #tpu.memory_space<vmem>>, vector<8x8xf32>,
    return
  }
  func.func @transform_0(%arg0: i32) -> (i32, i32) {
    %c0_i32 = arith.constant 0 : i32
    %c0_i32_0 = arith.constant 0 : i32
    return %arg0, %c0_i32 : i32, i32
  }
  func.func @transform_1(%arg0: i32) -> (i32, i32) {
    %c0_i32 = arith.constant 0 : i32
    %c0_i32_0 = arith.constant 0 : i32
    %c0_i32_1 = arith.constant 0 : i32
    return %c0_i32, %c0_i32_0 : i32, i32
  }
  func.func @transform_2(%arg0: i32) -> (i32, i32) {
    %c0_i32 = arith.constant 0 : i32
    %c0_i32_0 = arith.constant 0 : i32
    %c0_i32_1 = arith.constant 0 : i32
    return %c0_i32, %c0_i32_0 : i32, i32
  }
  func.func @transform_3(%arg0: i32) -> (i32, i32) {
    %c0_i32 = arith.constant 0 : i32
    %c0_i32_0 = arith.constant 0 : i32
    %c0_i32_1 = arith.constant 0 : i32
    return %c0_i32, %c0_i32_0 : i32, i32
  }
  func.func @transform_4(%arg0: i32) -> (i32, i32) {
    %c0_i32 = arith.constant 0 : i32
    %c0_i32_0 = arith.constant 0 : i32
    %c0_i32_1 = arith.constant 0 : i32
    return %c0_i32, %c0_i32_0 : i32, i32
  }
  func.func @transform_5(%arg0: i32) -> (i32, i32) {
    %c0_i32 = arith.constant 0 : i32
    %c0_i32_0 = arith.constant 0 : i32
    %c0_i32_1 = arith.constant 0 : i32
    return %c0_i32, %c0_i32_0 : i32, i32
  }
  func.func @transform_6(%arg0: i32) -> (i32, i32) {
    %c0_i32 = arith.constant 0 : i32
    %c0_i32_0 = arith.constant 0 : i32
    %c0_i32_1 = arith.constant 0 : i32
    return %c0_i32, %c0_i32_0 : i32, i32
  }
  func.func @transform_7(%arg0: i32) -> (i32, i32) {
    %c0_i32 = arith.constant 0 : i32
    %c0_i32_0 = arith.constant 0 : i32
    return %c0_i32, %arg0 : i32, i32
  }
}

</mosaic_0001>

<bundles_post_ra>
// kernel: tpu_custom_call.1
= control target key start
LH: loop header
LB: loop body
LE: loop exit
PB: predicated region body
PF: predicated region fallthrough
CT: control target
= control target key end

     0   :  { %12 = vsyncpa [#allocation3], 0  ;;  %s1933_s0 = inlined_call_operand.hbm [shape: f32[8,33], index: 0, kind: input, shape index: {}]   ;;  %s1934_s1 = inlined_call_operand.hbm [shape: bf16[33,512], index: 1, kind: input, shape index: {}]   ;;  %s1935_s2 = inlined_call_operand.hbm [shape: f32[1,512], index: 2, kind: input, shape index: {}]   ;;  %s1936_s3 = inlined_call_operand.hbm [shape: bf16[512,384], index: 3, kind: input, shape index: {}]   ;;  %s1937_s4 = inlined_call_operand.hbm [shape: f32[1,384], index: 4, kind: input, shape index: {}]   ;;  %s1938_s5 = inlined_call_operand.vmem [shape: bf16[8,384], index: 5, kind: input, shape index: {}]   ;;  %s1939_s6 = inlined_call_operand.vmem [shape: f32[8,1], index: 6, kind: input, shape index: {}]   ;;  %s1940_s7 = inlined_call_operand.hbm [shape: f32[8,8], index: 7, kind: output, shape index: {}]  }
   0x1   :  { %13 = vsyncpa [#allocation6], 0 }
   0x2   :  { %14 = vsyncpa [#allocation9], 0  ;;  %s31_s26 = sshll.u32 %s1934_s1, 4  ;;  %s32_s26 = int_to_ptr.hbm [resolvable:$true] %s31_s26 }
   0x3   :  { %15 = vsyncpa [#allocation4], 0  ;;  %s1831_s27 = smov [#allocation5]   ;;  %s55_s8 = sshll.u32 %s1936_s3, 4  ;;  %s56_s8 = int_to_ptr.hbm [resolvable:$true] %s55_s8 }
   0x4   :  { %s33_s28 = sshll.u32 %s1831_s27, 4  ;;  %s1832_s9 = smov 256   ;;  %s34_s28 = int_to_ptr.vmem [resolvable:$true] %s33_s28 }
   0x5   :  { %s1833_s10 = smov 16   ;;  %s1834_s11 = smov [#allocation8]  }
   0x6   :  { %39 = dma.hbm_to_vmem [thread:$0]  %s32_s26, 1280, %s34_s28, [#allocation6], %s1832_s9, %s1832_s9, %s1833_s10  }
   0x7   :  { %s57_s12 = sshll.u32 %s1834_s11, 4  ;;  %s1835_s13 = smov 192   ;;  %s58_s12 = int_to_ptr.vmem [resolvable:$true] %s57_s12 }
   0x8   :  { %s1836_s14 = smov 12   ;;  %s21_s16 = sshll.u32 %s1933_s0, 4  ;;  %s22_s16 = int_to_ptr.hbm [resolvable:$true] %s21_s16 }
   0x9   :  { %63 = dma.hbm_to_vmem [thread:$0]  %s56_s8, 12288, %s58_s12, [#allocation9], %s1835_s13, %s1835_s13, %s1836_s14  }
   0xa   :  { %s1837_s17 = smov [#allocation2]   ;;  %s45_s20 = sshll.u32 %s1935_s2, 4  ;;  %s46_s20 = int_to_ptr.hbm [resolvable:$true] %s45_s20 }
   0xb   :  { %s23_s18 = sshll.u32 %s1837_s17, 4  ;;  %s1838_s21 = smov [#allocation7]   ;;  %s24_s18 = int_to_ptr.vmem [resolvable:$true] %s23_s18 }
   0xc   :  { %26 = dma.hbm_to_vmem [thread:$0]  %s22_s16, 128, %s24_s18, [#allocation3]  }
   0xd   :  { %s47_s22 = sshll.u32 %s1838_s21, 4  ;;  %s69_s25 = sshll.u32 %s1937_s4, 4  ;;  %s48_s22 = int_to_ptr.vmem [resolvable:$true] %s47_s22  ;;  %s70_s25 = int_to_ptr.hbm [resolvable:$true] %s69_s25 }
   0xe   :  { %50 = dma.hbm_to_vmem [thread:$0]  %s46_s20, 64, %s48_s22, [#allocation6]  }
   0xf   :  { %s1839_s0 = smov [#allocation10]  }
  0x10   :  { %s71_s26 = sshll.u32 %s1839_s0, 4  ;;  %s72_s26 = int_to_ptr.vmem [resolvable:$true] %s71_s26 }
  0x11   :  { %74 = dma.hbm_to_vmem [thread:$0]  %s70_s25, 48, %s72_s26, [#allocation9]  }
  0x12   :  { %1823 = dma.done.wait [#allocation3], 128  }
  0x13   :  { %1824 = vsyncadd [#allocation3], 4294967168 }
  0x14   :  { %1825 = dma.done.wait [#allocation6], 1344  }
  0x15   :  { %1826 = vsyncadd [#allocation6], 4294965952 }
  0x16   :  { %1827 = dma.done.wait [#allocation9], 12336  }
  0x17   :  { %1828 = vsyncadd [#allocation9], 4294954960  ;;  %v1840_v0 = vmov 0   ;;  %vm176_vm0 = vcmask 1040384   ;;  %v110_v1 = vld [vmem:[#allocation5 + $0x40] sm:$0x11] }
  0x18   :  { %1676 = vset.pattern.permute.xlu0 %v1840_v0  ;;  %v111_v2 = vld [vmem:[#allocation5 + $0x48] sm:$0x11]  ;;  %v148_v3 = vunpack.c.l.b16 %v110_v1  ;;  %v149_v4 = vunpack.c.h.b16 %v110_v1  ;;  %v178_v7 = vsel %vm176_vm0, 65535, %v1840_v0  ;;  %v1159_v12 = vld [vmem:[#allocation5 + $0x20] sm:$0xf]  ;;  %v100_v42 = vld [vmem:[#allocation2] sm:$0xff] }
  0x19   :  { %v150_v5 = vunpack.c.l.b16 %v111_v2  ;;  %v151_v6 = vunpack.c.h.b16 %v111_v2  ;;  %v1567_v13 = vld [vmem:[#allocation5 + $0x2c] sm:$0xf0]  ;;  %v1565_v14 = vld [vmem:[#allocation5 + $0x24] sm:$0xf]  ;;  %v1161_v15 = vld [vmem:[#allocation5 + $0x30] sm:$0xf0]  ;;  %v101_v52 = vpack.c.bf16 %v100_v42, %v100_v42 }
  0x1a   :  { %v160_v8 = vpack.c.b16 %v148_v3, %v148_v3  ;;  %v161_v9 = vpack.c.b16 %v149_v4, %v149_v4  ;;  %v1167_v16 = vld [vmem:[#allocation5 + $0x28] sm:$0xf]  ;;  %v1568_v21 = vld [vmem:[#allocation5 + $0x34] sm:$0xf0]  ;;  %v1566_v22 = vld [vmem:[#allocation5 + $0x2c] sm:$0xf]  ;;  %v1160_v24 = vor.u32 %v1567_v13, %v1159_v12  ;;  %v1164_v25 = vor.u32 %v1565_v14, %v1161_v15 }
  0x1b   :  { %v162_v10 = vpack.c.b16 %v150_v5, %v150_v5  ;;  %v163_v11 = vpack.c.b16 %v151_v6, %v151_v6  ;;  %v1169_v23 = vld [vmem:[#allocation5 + $0x38] sm:$0xf0]  ;;  %v1143_v26 = vld [vmem:[#allocation5] sm:$0xf]  ;;  %v1563_v27 = vld [vmem:[#allocation5 + $0xc] sm:$0xf0]  ;;  %v1168_v29 = vor.u32 %v1568_v21, %v1167_v16 }
  0x1c   :  { %v180_v17 = vand.u32 %v178_v7, %v160_v8  ;;  %v183_v18 = vand.u32 %v178_v7, %v161_v9  ;;  %v1561_v28 = vld [vmem:[#allocation5 + $0x4] sm:$0xf]  ;;  %v1172_v30 = vor.u32 %v1566_v22, %v1169_v23  ;;  %v1145_v31 = vld [vmem:[#allocation5 + $0x10] sm:$0xf0]  ;;  %v1151_v32 = vld [vmem:[#allocation5 + $0x8] sm:$0xf]  ;;  %v1144_v40 = vor.u32 %v1563_v27, %v1143_v26 }
  0x1d   :  { %v186_v19 = vand.u32 %v178_v7, %v162_v10  ;;  %v189_v20 = vand.u32 %v178_v7, %v163_v11  ;;  %v1564_v33 = vld [vmem:[#allocation5 + $0x14] sm:$0xf0]  ;;  %v1562_v34 = vld [vmem:[#allocation5 + $0xc] sm:$0xf]  ;;  %v1153_v35 = vld [vmem:[#allocation5 + $0x18] sm:$0xf0]  ;;  %v1148_v41 = vor.u32 %v1561_v28, %v1145_v31 }
  0x1e   :  { %196 = vmatpush.bf16.msra.mxu0 %v180_v17  ;;  %209 = vmatpush.bf16.msra.mxu1 %v183_v18  ;;  %v1263_v36 = vld [vmem:[#allocation8 + $0xa8] sm:$0xf]  ;;  %v1591_v37 = vld [vmem:[#allocation8 + $0xb0] sm:$0xf0]  ;;  %v1152_v43 = vor.u32 %v1564_v33, %v1151_v32  ;;  %v1156_v44 = vor.u32 %v1562_v34, %v1153_v35  ;;  %v1251_v45 = vld [vmem:[#allocation8 + $0x90] sm:$0xf] }
  0x1f   :  { %222 = vmatpush.bf16.msra.mxu2 %v186_v19  ;;  %235 = vmatpush.bf16.msra.mxu3 %v189_v20  ;;  %v1359_v38 = vld [vmem:[#allocation8 + $0x168] sm:$0xf]  ;;  %v1615_v39 = vld [vmem:[#allocation8 + $0x170] sm:$0xf0]  ;;  %v1264_v47 = vor.u32 %v1591_v37, %v1263_v36  ;;  %v1588_v53 = vld [vmem:[#allocation8 + $0x98] sm:$0xf0] }
  0x20   :  { %v1455_v46 = vld [vmem:[#allocation8 + $0x228] sm:$0xf]  ;;  %v1360_v48 = vor.u32 %v1615_v39, %v1359_v38  ;;  %v1639_v49 = vld [vmem:[#allocation8 + $0x230] sm:$0xf0]  ;;  %v1347_v54 = vld [vmem:[#allocation8 + $0x150] sm:$0xf]  ;;  %v1252_v60 = vor.u32 %v1588_v53, %v1251_v45 }
  0x21   :  { %v1551_v50 = vld [vmem:[#allocation8 + $0x2e8] sm:$0xf]  ;;  %v1663_v51 = vld [vmem:[#allocation8 + $0x2f0] sm:$0xf0]  ;;  %v1612_v55 = vld [vmem:[#allocation8 + $0x158] sm:$0xf0]  ;;  %v1456_v56 = vor.u32 %v1639_v49, %v1455_v46 }
  0x22   :  { %197 = vmatpush.bf16.msra.mxu0 %v1160_v24  ;;  %210 = vmatpush.bf16.msra.mxu1 %v1164_v25  ;;  %vm172_vm1 = vcmask 269312   ;;  %v1552_v57 = vor.u32 %v1663_v51, %v1551_v50  ;;  %v1239_v58 = vld [vmem:[#allocation8 + $0x78] sm:$0xf]  ;;  %v1443_v59 = vld [vmem:[#allocation8 + $0x210] sm:$0xf]  ;;  %v1348_v61 = vor.u32 %v1612_v55, %v1347_v54  ;;  %s1841_s30 = smov [#allocation11]  }
  0x23   :  { %223 = vmatpush.bf16.msra.mxu2 %v1168_v29  ;;  %236 = vmatpush.bf16.msra.mxu3 %v1172_v30  ;;  %v1636_v62 = vld [vmem:[#allocation8 + $0x218] sm:$0xf0]  ;;  %v1539_v63 = vld [vmem:[#allocation8 + $0x2d0] sm:$0xf]  ;;  %v1585_v1 = vld [vmem:[#allocation8 + $0x80] sm:$0xf0] }
  0x24   :  { %v1660_v0 = vld [vmem:[#allocation8 + $0x2d8] sm:$0xf0]  ;;  %v1335_v2 = vld [vmem:[#allocation8 + $0x138] sm:$0xf]  ;;  %v1609_v3 = vld [vmem:[#allocation8 + $0x140] sm:$0xf0]  ;;  %v1444_v4 = vor.u32 %v1636_v62, %v1443_v59  ;;  %v1240_v8 = vor.u32 %v1585_v1, %v1239_v58 }
  0x25   :  { %v1540_v5 = vor.u32 %v1660_v0, %v1539_v63  ;;  %v1227_v6 = vld [vmem:[#allocation8 + $0x60] sm:$0xf]  ;;  %v1431_v7 = vld [vmem:[#allocation8 + $0x1f8] sm:$0xf]  ;;  %v1336_v9 = vor.u32 %v1609_v3, %v1335_v2  ;;  %v1633_v10 = vld [vmem:[#allocation8 + $0x200] sm:$0xf0] }
  0x26   :  { %198 = vmatpush.bf16.msra.mxu0 %v1144_v40  ;;  %211 = vmatpush.bf16.msra.mxu1 %v1148_v41  ;;  %v1527_v11 = vld [vmem:[#allocation8 + $0x2b8] sm:$0xf]  ;;  %v1657_v12 = vld [vmem:[#allocation8 + $0x2c0] sm:$0xf0]  ;;  %v1582_v13 = vld [vmem:[#allocation8 + $0x68] sm:$0xf0]  ;;  %v1432_v16 = vor.u32 %v1633_v10, %v1431_v7 }
  0x27   :  { %224 = vmatpush.bf16.msra.mxu2 %v1152_v43  ;;  %237 = vmatpush.bf16.msra.mxu3 %v1156_v44  ;;  %v1323_v14 = vld [vmem:[#allocation8 + $0x120] sm:$0xf]  ;;  %v1606_v15 = vld [vmem:[#allocation8 + $0x128] sm:$0xf0]  ;;  %v1528_v17 = vor.u32 %v1657_v12, %v1527_v11  ;;  %v1215_v18 = vld [vmem:[#allocation8 + $0x48] sm:$0xf]  ;;  %v1228_v20 = vor.u32 %v1582_v13, %v1227_v6 }
  0x28   :  { %v1419_v19 = vld [vmem:[#allocation8 + $0x1e0] sm:$0xf]  ;;  %v1324_v21 = vor.u32 %v1606_v15, %v1323_v14  ;;  %v1630_v22 = vld [vmem:[#allocation8 + $0x1e8] sm:$0xf0]  ;;  %v1579_v25 = vld [vmem:[#allocation8 + $0x50] sm:$0xf0] }
  0x29   :  { %1173 = vmatmul.msk.bf16.vlgmr.msra.gmra.mxu0 %vm172_vm1, %v101_v52  ;;  %1174 = vmatmul.msk.bf16.vlgmr.msra.gmra.mxu1 %vm172_vm1, %v101_v52  ;;  %v1515_v23 = vld [vmem:[#allocation8 + $0x2a0] sm:$0xf]  ;;  %v1654_v24 = vld [vmem:[#allocation8 + $0x2a8] sm:$0xf0]  ;;  %v1311_v26 = vld [vmem:[#allocation8 + $0x108] sm:$0xf]  ;;  %v1420_v28 = vor.u32 %v1630_v22, %v1419_v19  ;;  %v1216_v32 = vor.u32 %v1579_v25, %v1215_v18 }
  0x2a   :  { %899 = vmatpush.bf16.msrb.mxu0 %v1264_v47  ;;  %912 = vmatpush.bf16.msrb.mxu1 %v1360_v48  ;;  %v1603_v27 = vld [vmem:[#allocation8 + $0x110] sm:$0xf0]  ;;  %v1516_v29 = vor.u32 %v1654_v24, %v1515_v23  ;;  %v1203_v30 = vld [vmem:[#allocation8 + $0x30] sm:$0xf]  ;;  %v1407_v31 = vld [vmem:[#allocation8 + $0x1c8] sm:$0xf] }
  0x2b   :  { %1175 = vmatmul.msk.bf16.vlgmr.msra.gmra.mxu2 %vm172_vm1, %v101_v52  ;;  %1176 = vmatmul.msk.bf16.vlgmr.msra.gmra.mxu3 %vm172_vm1, %v101_v52  ;;  %v1312_v33 = vor.u32 %v1603_v27, %v1311_v26  ;;  %v1627_v34 = vld [vmem:[#allocation8 + $0x1d0] sm:$0xf0]  ;;  %v1503_v35 = vld [vmem:[#allocation8 + $0x288] sm:$0xf]  ;;  %v1576_v37 = vld [vmem:[#allocation8 + $0x38] sm:$0xf0] }
  0x2c   :  { %925 = vmatpush.bf16.msrb.mxu2 %v1456_v56  ;;  %938 = vmatpush.bf16.msrb.mxu3 %v1552_v57  ;;  %v1651_v36 = vld [vmem:[#allocation8 + $0x290] sm:$0xf0]  ;;  %v1299_v38 = vld [vmem:[#allocation8 + $0xf0] sm:$0xf]  ;;  %v1600_v39 = vld [vmem:[#allocation8 + $0xf8] sm:$0xf0]  ;;  %v1408_v40 = vor.u32 %v1627_v34, %v1407_v31  ;;  %v1204_v44 = vor.u32 %v1576_v37, %v1203_v30 }
  0x2d   :  { %v1504_v41 = vor.u32 %v1651_v36, %v1503_v35  ;;  %v1191_v42 = vld [vmem:[#allocation8 + $0x18] sm:$0xf]  ;;  %v1395_v43 = vld [vmem:[#allocation8 + $0x1b0] sm:$0xf]  ;;  %v1300_v45 = vor.u32 %v1600_v39, %v1299_v38  ;;  %v1624_v46 = vld [vmem:[#allocation8 + $0x1b8] sm:$0xf0] }
  0x2e   :  { %900 = vmatpush.bf16.msrb.mxu0 %v1252_v60  ;;  %913 = vmatpush.bf16.msrb.mxu1 %v1348_v61  ;;  %v1491_v47 = vld [vmem:[#allocation8 + $0x270] sm:$0xf]  ;;  %v1648_v48 = vld [vmem:[#allocation8 + $0x278] sm:$0xf0]  ;;  %v1573_v49 = vld [vmem:[#allocation8 + $0x20] sm:$0xf0]  ;;  %v1396_v52 = vor.u32 %v1624_v46, %v1395_v43 }
  0x2f   :  { %v1287_v50 = vld [vmem:[#allocation8 + $0xd8] sm:$0xf]  ;;  %v1597_v51 = vld [vmem:[#allocation8 + $0xe0] sm:$0xf0]  ;;  %v1492_v53 = vor.u32 %v1648_v48, %v1491_v47  ;;  %v1179_v54 = vld [vmem:[#allocation8] sm:$0xf]  ;;  %v1192_v57 = vor.u32 %v1573_v49, %v1191_v42 }
  0x30   :  { %926 = vmatpush.bf16.msrb.mxu2 %v1444_v4  ;;  %939 = vmatpush.bf16.msrb.mxu3 %v1540_v5  ;;  %v1570_v55 = vld [vmem:[#allocation8 + $0x8] sm:$0xf0]  ;;  %v1383_v56 = vld [vmem:[#allocation8 + $0x198] sm:$0xf]  ;;  %v1288_v58 = vor.u32 %v1597_v51, %v1287_v50  ;;  %v1621_v59 = vld [vmem:[#allocation8 + $0x1a0] sm:$0xf0] }
  0x31   :  { %v1479_v60 = vld [vmem:[#allocation8 + $0x258] sm:$0xf]  ;;  %v1645_v61 = vld [vmem:[#allocation8 + $0x260] sm:$0xf0]  ;;  %v1275_v62 = vld [vmem:[#allocation8 + $0xc0] sm:$0xf]  ;;  %v1384_v4 = vor.u32 %v1621_v59, %v1383_v56 }
  0x32   :  { %901 = vmatpush.bf16.msrb.mxu0 %v1240_v8  ;;  %914 = vmatpush.bf16.msrb.mxu1 %v1336_v9  ;;  %v1594_v63 = vld [vmem:[#allocation8 + $0xc8] sm:$0xf0]  ;;  %v1265_v1 = vld [vmem:[#allocation8 + $0xb4] sm:$0xf0]  ;;  %v1480_v5 = vor.u32 %v1645_v61, %v1479_v60  ;;  %v1371_v6 = vld [vmem:[#allocation8 + $0x180] sm:$0xf]  ;;  %v1180_v8 = vor.u32 %v1570_v55, %v1179_v54 }
  0x33   :  { %v1590_v0 = vld [vmem:[#allocation8 + $0xac] sm:$0xf]  ;;  %v1361_v3 = vld [vmem:[#allocation8 + $0x174] sm:$0xf0]  ;;  %v1276_v9 = vor.u32 %v1594_v63, %v1275_v62  ;;  %v1587_v10 = vld [vmem:[#allocation8 + $0x94] sm:$0xf] }
  0x34   :  { %927 = vmatpush.bf16.msrb.mxu2 %v1432_v16  ;;  %940 = vmatpush.bf16.msrb.mxu3 %v1528_v17  ;;  %v1614_v2 = vld [vmem:[#allocation8 + $0x16c] sm:$0xf]  ;;  %v1467_v11 = vld [vmem:[#allocation8 + $0x240] sm:$0xf]  ;;  %v1268_v14 = vor.u32 %v1590_v0, %v1265_v1  ;;  %v1457_v16 = vld [vmem:[#allocation8 + $0x234] sm:$0xf0] }
  0x35   :  { %v1618_v7 = vld [vmem:[#allocation8 + $0x188] sm:$0xf0]  ;;  %v1364_v15 = vor.u32 %v1614_v2, %v1361_v3  ;;  %v1553_v18 = vld [vmem:[#allocation8 + $0x2f4] sm:$0xf0]  ;;  %v1253_v19 = vld [vmem:[#allocation8 + $0x9c] sm:$0xf0] }
  0x36   :  { %902 = vmatpush.bf16.msrb.mxu0 %v1228_v20  ;;  %915 = vmatpush.bf16.msrb.mxu1 %v1324_v21  ;;  %v1642_v12 = vld [vmem:[#allocation8 + $0x248] sm:$0xf0]  ;;  %v1611_v20 = vld [vmem:[#allocation8 + $0x154] sm:$0xf]  ;;  %v1349_v21 = vld [vmem:[#allocation8 + $0x15c] sm:$0xf0]  ;;  %v1372_v22 = vor.u32 %v1618_v7, %v1371_v6 }
  0x37   :  { %v1638_v13 = vld [vmem:[#allocation8 + $0x22c] sm:$0xf]  ;;  %v1468_v23 = vor.u32 %v1642_v12, %v1467_v11  ;;  %v1584_v26 = vld [vmem:[#allocation8 + $0x7c] sm:$0xf]  ;;  %v1635_v27 = vld [vmem:[#allocation8 + $0x214] sm:$0xf] }
  0x38   :  { %928 = vmatpush.bf16.msrb.mxu2 %v1420_v28  ;;  %941 = vmatpush.bf16.msrb.mxu3 %v1516_v29  ;;  %v1662_v17 = vld [vmem:[#allocation8 + $0x2ec] sm:$0xf]  ;;  %v1460_v24 = vor.u32 %v1638_v13, %v1457_v16  ;;  %v1256_v28 = vor.u32 %v1587_v10, %v1253_v19  ;;  %v1352_v29 = vor.u32 %v1611_v20, %v1349_v21  ;;  %v1445_v30 = vld [vmem:[#allocation8 + $0x21c] sm:$0xf0]  ;;  %v1659_v31 = vld [vmem:[#allocation8 + $0x2d4] sm:$0xf] }
  0x39   :  { %v1556_v25 = vor.u32 %v1662_v17, %v1553_v18  ;;  %v1608_v34 = vld [vmem:[#allocation8 + $0x13c] sm:$0xf]  ;;  %v1337_v35 = vld [vmem:[#allocation8 + $0x144] sm:$0xf0]  ;;  %v1448_v36 = vor.u32 %v1635_v27, %v1445_v30  ;;  %v1581_v38 = vld [vmem:[#allocation8 + $0x64] sm:$0xf] }
  0x3a   :  { %903 = vmatpush.bf16.msrb.mxu0 %v1216_v32  ;;  %916 = vmatpush.bf16.msrb.mxu1 %v1312_v33  ;;  %v1541_v32 = vld [vmem:[#allocation8 + $0x2dc] sm:$0xf0]  ;;  %v1241_v33 = vld [vmem:[#allocation8 + $0x84] sm:$0xf0]  ;;  %v1632_v39 = vld [vmem:[#allocation8 + $0x1fc] sm:$0xf] }
  0x3b   :  { %v1544_v37 = vor.u32 %v1659_v31, %v1541_v32  ;;  %v1433_v42 = vld [vmem:[#allocation8 + $0x204] sm:$0xf0]  ;;  %v1656_v43 = vld [vmem:[#allocation8 + $0x2bc] sm:$0xf]  ;;  %v1605_v46 = vld [vmem:[#allocation8 + $0x124] sm:$0xf] }
  0x3c   :  { %929 = vmatpush.bf16.msrb.mxu2 %v1408_v40  ;;  %942 = vmatpush.bf16.msrb.mxu3 %v1504_v41  ;;  %v1244_v40 = vor.u32 %v1584_v26, %v1241_v33  ;;  %v1340_v41 = vor.u32 %v1608_v34, %v1337_v35  ;;  %v1325_v47 = vld [vmem:[#allocation8 + $0x12c] sm:$0xf0]  ;;  %v1436_v48 = vor.u32 %v1632_v39, %v1433_v42  ;;  %v1578_v50 = vld [vmem:[#allocation8 + $0x4c] sm:$0xf]  ;;  %v1629_v51 = vld [vmem:[#allocation8 + $0x1e4] sm:$0xf] }
  0x3d   :  { %v1421_v54 = vld [vmem:[#allocation8 + $0x1ec] sm:$0xf0]  ;;  %v1653_v55 = vld [vmem:[#allocation8 + $0x2a4] sm:$0xf]  ;;  %v1313_v59 = vld [vmem:[#allocation8 + $0x114] sm:$0xf0] }
  0x3e   :  { %904 = vmatpush.bf16.msrb.mxu0 %v1204_v44  ;;  %917 = vmatpush.bf16.msrb.mxu1 %v1300_v45  ;;  %v1529_v44 = vld [vmem:[#allocation8 + $0x2c4] sm:$0xf0]  ;;  %v1229_v45 = vld [vmem:[#allocation8 + $0x6c] sm:$0xf0]  ;;  %v1424_v60 = vor.u32 %v1629_v51, %v1421_v54  ;;  %v1575_v0 = vld [vmem:[#allocation8 + $0x34] sm:$0xf] }
  0x3f   :  { %v1532_v49 = vor.u32 %v1656_v43, %v1529_v44  ;;  %v1517_v56 = vld [vmem:[#allocation8 + $0x2ac] sm:$0xf0]  ;;  %v1205_v1 = vld [vmem:[#allocation8 + $0x3c] sm:$0xf0]  ;;  %v1599_v2 = vld [vmem:[#allocation8 + $0xf4] sm:$0xf] }
  0x40   :  { %930 = vmatpush.bf16.msrb.mxu2 %v1396_v52  ;;  %943 = vmatpush.bf16.msrb.mxu3 %v1492_v53  ;;  %v1232_v52 = vor.u32 %v1581_v38, %v1229_v45  ;;  %v1328_v53 = vor.u32 %v1605_v46, %v1325_v47  ;;  %v1520_v61 = vor.u32 %v1653_v55, %v1517_v56  ;;  %v1301_v3 = vld [vmem:[#allocation8 + $0xfc] sm:$0xf0]  ;;  %v1626_v6 = vld [vmem:[#allocation8 + $0x1cc] sm:$0xf]  ;;  %v1409_v7 = vld [vmem:[#allocation8 + $0x1d4] sm:$0xf0] }
  0x41   :  { %v1505_v10 = vld [vmem:[#allocation8 + $0x294] sm:$0xf0]  ;;  %v1572_v12 = vld [vmem:[#allocation8 + $0x1c] sm:$0xf]  ;;  %v1193_v13 = vld [vmem:[#allocation8 + $0x24] sm:$0xf0] }
  0x42   :  { %905 = vmatpush.bf16.msrb.mxu0 %v1192_v57  ;;  %918 = vmatpush.bf16.msrb.mxu1 %v1288_v58  ;;  %v1217_v57 = vld [vmem:[#allocation8 + $0x54] sm:$0xf0]  ;;  %v1602_v58 = vld [vmem:[#allocation8 + $0x10c] sm:$0xf]  ;;  %v1289_v16 = vld [vmem:[#allocation8 + $0xe4] sm:$0xf0] }
  0x43   :  { %v1220_v62 = vor.u32 %v1578_v50, %v1217_v57  ;;  %v1316_v63 = vor.u32 %v1602_v58, %v1313_v59  ;;  %v1623_v18 = vld [vmem:[#allocation8 + $0x1b4] sm:$0xf]  ;;  %v1397_v19 = vld [vmem:[#allocation8 + $0x1bc] sm:$0xf0]  ;;  %v1593_v27 = vld [vmem:[#allocation8 + $0xc4] sm:$0xf] }
  0x44   :  { %931 = vmatpush.bf16.msrb.mxu2 %v1384_v4  ;;  %944 = vmatpush.bf16.msrb.mxu3 %v1480_v5  ;;  %v1208_v4 = vor.u32 %v1575_v0, %v1205_v1  ;;  %v1304_v5 = vor.u32 %v1599_v2, %v1301_v3  ;;  %v1647_v20 = vld [vmem:[#allocation8 + $0x274] sm:$0xf]  ;;  %v1400_v21 = vor.u32 %v1623_v18, %v1397_v19  ;;  %v1620_v30 = vld [vmem:[#allocation8 + $0x19c] sm:$0xf]  ;;  %v1385_v31 = vld [vmem:[#allocation8 + $0x1a4] sm:$0xf0] }
  0x45   :  { %v1388_v32 = vor.u32 %v1620_v30, %v1385_v31  ;;  %v1644_v33 = vld [vmem:[#allocation8 + $0x25c] sm:$0xf]  ;;  %v1481_v34 = vld [vmem:[#allocation8 + $0x264] sm:$0xf0]  ;;  %v1641_v39 = vld [vmem:[#allocation8 + $0x244] sm:$0xf] }
  0x46   :  { %906 = vmatpush.bf16.msrb.mxu0 %v1180_v8  ;;  %919 = vmatpush.bf16.msrb.mxu1 %v1276_v9  ;;  %v1650_v8 = vld [vmem:[#allocation8 + $0x28c] sm:$0xf]  ;;  %v1412_v9 = vor.u32 %v1626_v6, %v1409_v7  ;;  %v1484_v35 = vor.u32 %v1644_v33, %v1481_v34  ;;  %v112_v42 = vld [vmem:[#allocation7] sm:$0xf]  ;;  %v1271_v47 = vld [vmem:[#allocation8 + $0xb0] sm:$0xf] }
  0x47   :  { %v1508_v11 = vor.u32 %v1650_v8, %v1505_v10  ;;  %v114_v43 = vperm.slane %v112_v42, 0  ;;  %v115_v44 = vperm.slane %v112_v42, 1  ;;  %v1592_v50 = vld [vmem:[#allocation8 + $0xb8] sm:$0xf0]  ;;  %v1367_v51 = vld [vmem:[#allocation8 + $0x170] sm:$0xf] }
  0x48   :  { %932 = vmatpush.bf16.msrb.mxu2 %v1372_v22  ;;  %945 = vmatpush.bf16.msrb.mxu3 %v1468_v23  ;;  %v1493_v22 = vld [vmem:[#allocation8 + $0x27c] sm:$0xf0]  ;;  %v116_v55 = vperm.slane %v112_v42, 2  ;;  %v117_v56 = vperm.slane %v112_v42, 3  ;;  %v1272_v57 = vor.u32 %v1592_v50, %v1271_v47  ;;  %v1259_v59 = vld [vmem:[#allocation8 + $0x98] sm:$0xf] }
  0x49   :  { %v1496_v23 = vor.u32 %v1647_v20, %v1493_v22  ;;  %v1613_v0 = vld [vmem:[#allocation8 + $0x160] sm:$0xf0]  ;;  %v1559_v6 = vld [vmem:[#allocation8 + $0x2f0] sm:$0xf]  ;;  %v1451_v22 = vld [vmem:[#allocation8 + $0x218] sm:$0xf] }
  0x4a   :  { %951 = vmatpush.bf16.msra.mxu0 %v1268_v14  ;;  %964 = vmatpush.bf16.msra.mxu1 %v1364_v15  ;;  %v1596_v14 = vld [vmem:[#allocation8 + $0xdc] sm:$0xf]  ;;  %v1196_v15 = vor.u32 %v1572_v12, %v1193_v13  ;;  %v1247_v13 = vld [vmem:[#allocation8 + $0x80] sm:$0xf]  ;;  %v1583_v30 = vld [vmem:[#allocation8 + $0x70] sm:$0xf0] }
  0x4b   :  { %v1292_v17 = vor.u32 %v1596_v14, %v1289_v16  ;;  %v1664_v12 = vld [vmem:[#allocation8 + $0x2f8] sm:$0xf0]  ;;  %v1586_v14 = vld [vmem:[#allocation8 + $0x88] sm:$0xf0]  ;;  %v1331_v31 = vld [vmem:[#allocation8 + $0x128] sm:$0xf] }
  0x4c   :  { %977 = vmatpush.bf16.msra.mxu2 %v1460_v24  ;;  %990 = vmatpush.bf16.msra.mxu3 %v1556_v25  ;;  %v1569_v24 = vld [vmem:[#allocation8 + $0x4] sm:$0xf]  ;;  %v1181_v25 = vld [vmem:[#allocation8 + $0xc] sm:$0xf0]  ;;  %v1610_v16 = vld [vmem:[#allocation8 + $0x148] sm:$0xf0]  ;;  %v1560_v20 = vor.u32 %v1664_v12, %v1559_v6 }
  0x4d   :  { %v1184_v26 = vor.u32 %v1569_v24, %v1181_v25  ;;  %v1658_v42 = vld [vmem:[#allocation8 + $0x2c8] sm:$0xf0]  ;;  %v1631_v50 = vld [vmem:[#allocation8 + $0x1f0] sm:$0xf0]  ;;  %v1625_v12 = vld [vmem:[#allocation8 + $0x1c0] sm:$0xf0] }
  0x4e   :  { %952 = vmatpush.bf16.msra.mxu0 %v1256_v28  ;;  %965 = vmatpush.bf16.msra.mxu1 %v1352_v29  ;;  %v1277_v28 = vld [vmem:[#allocation8 + $0xcc] sm:$0xf0]  ;;  %v1574_v6 = vld [vmem:[#allocation8 + $0x28] sm:$0xf0]  ;;  %s1127_s8 = sshll.u32 %s1841_s30, 4  ;;  %s1129_s10 = sshll.u32 %s1940_s7, 4  ;;  %s1128_s8 = int_to_ptr.vmem [resolvable:$true] %s1127_s8  ;;  %s1130_s10 = int_to_ptr.hbm [resolvable:$true] %s1129_s10 }
  0x4f   :  { %v1280_v29 = vor.u32 %v1593_v27, %v1277_v28  ;;  %v1547_v27 = vld [vmem:[#allocation8 + $0x2d8] sm:$0xf]  ;;  %v1661_v28 = vld [vmem:[#allocation8 + $0x2e0] sm:$0xf0]  ;;  %vm1120_vm2 = vcmask 64512  }
  0x50   :  { %978 = vmatpush.bf16.msra.mxu2 %v1448_v36  ;;  %991 = vmatpush.bf16.msra.mxu3 %v1544_v37  ;;  %v1617_v36 = vld [vmem:[#allocation8 + $0x184] sm:$0xf]  ;;  %v1373_v37 = vld [vmem:[#allocation8 + $0x18c] sm:$0xf0] }
  0x51   :  { %v1376_v38 = vor.u32 %v1617_v36, %v1373_v37  ;;  %v1548_v36 = vor.u32 %v1661_v28, %v1547_v27  ;;  %v1439_v37 = vld [vmem:[#allocation8 + $0x200] sm:$0xf]  ;;  %v1646_v28 = vld [vmem:[#allocation8 + $0x268] sm:$0xf0] }
  0x52   :  { %953 = vmatpush.bf16.msra.mxu0 %v1244_v40  ;;  %966 = vmatpush.bf16.msra.mxu1 %v1340_v41  ;;  %v1469_v40 = vld [vmem:[#allocation8 + $0x24c] sm:$0xf0]  ;;  %v1487_v27 = vld [vmem:[#allocation8 + $0x260] sm:$0xf] }
  0x53   :  { %v1472_v41 = vor.u32 %v1641_v39, %v1469_v40  ;;  %v1634_v40 = vld [vmem:[#allocation8 + $0x208] sm:$0xf0] }
  0x54   :  { %979 = vmatpush.bf16.msra.mxu2 %v1436_v48  ;;  %992 = vmatpush.bf16.msra.mxu3 %v1532_v49  ;;  %v1440_v47 = vor.u32 %v1634_v40, %v1439_v37 }
  0x56   :  { %954 = vmatpush.bf16.msra.mxu0 %v1232_v52  ;;  %967 = vmatpush.bf16.msra.mxu1 %v1328_v53  ;;  %v1616_v52 = vld [vmem:[#allocation8 + $0x178] sm:$0xf0] }
  0x57   :  { %v1368_v58 = vor.u32 %v1616_v52, %v1367_v51  ;;  %v1523_v51 = vld [vmem:[#allocation8 + $0x2a8] sm:$0xf]  ;;  %v1655_v52 = vld [vmem:[#allocation8 + $0x2b0] sm:$0xf0] }
  0x58   :  { %980 = vmatpush.bf16.msra.mxu2 %v1424_v60  ;;  %993 = vmatpush.bf16.msra.mxu3 %v1520_v61  ;;  %v1589_v60 = vld [vmem:[#allocation8 + $0xa0] sm:$0xf0] }
  0x59   :  { %v1260_v3 = vor.u32 %v1589_v60, %v1259_v59  ;;  %v1524_v60 = vor.u32 %v1655_v52, %v1523_v51 }
  0x5a   :  { %955 = vmatpush.bf16.msra.mxu0 %v1220_v62  ;;  %968 = vmatpush.bf16.msra.mxu1 %v1316_v63  ;;  %v1355_v63 = vld [vmem:[#allocation8 + $0x158] sm:$0xf] }
  0x5c   :  { %981 = vmatpush.bf16.msra.mxu2 %v1412_v9  ;;  %994 = vmatpush.bf16.msra.mxu3 %v1508_v11  ;;  %v1356_v11 = vor.u32 %v1613_v0, %v1355_v63  ;;  %v1415_v63 = vld [vmem:[#allocation8 + $0x1d0] sm:$0xf]  ;;  %v1628_v0 = vld [vmem:[#allocation8 + $0x1d8] sm:$0xf0] }
  0x5e   :  { %956 = vmatpush.bf16.msra.mxu0 %v1208_v4  ;;  %969 = vmatpush.bf16.msra.mxu1 %v1304_v5  ;;  %v1463_v4 = vld [vmem:[#allocation8 + $0x230] sm:$0xf]  ;;  %v1640_v5 = vld [vmem:[#allocation8 + $0x238] sm:$0xf0] }
  0x5f   :  { %v1464_v19 = vor.u32 %v1640_v5, %v1463_v4  ;;  %v1199_v5 = vld [vmem:[#allocation8 + $0x20] sm:$0xf] }
  0x60   :  { %982 = vmatpush.bf16.msra.mxu2 %v1400_v21  ;;  %995 = vmatpush.bf16.msra.mxu3 %v1496_v23  ;;  %v1248_v21 = vor.u32 %v1586_v14, %v1247_v13  ;;  %v1637_v23 = vld [vmem:[#allocation8 + $0x220] sm:$0xf0]  ;;  %v1499_v13 = vld [vmem:[#allocation8 + $0x278] sm:$0xf] }
  0x61   :  { %v1649_v14 = vld [vmem:[#allocation8 + $0x280] sm:$0xf0] }
  0x62   :  { %957 = vmatpush.bf16.msra.mxu0 %v1196_v15  ;;  %970 = vmatpush.bf16.msra.mxu1 %v1292_v17  ;;  %v1343_v15 = vld [vmem:[#allocation8 + $0x140] sm:$0xf] }
  0x64   :  { %983 = vmatpush.bf16.msra.mxu2 %v1388_v32  ;;  %996 = vmatpush.bf16.msra.mxu3 %v1484_v35  ;;  %v1607_v32 = vld [vmem:[#allocation8 + $0x130] sm:$0xf0]  ;;  %v1452_v35 = vor.u32 %v1637_v23, %v1451_v22  ;;  %v1500_v22 = vor.u32 %v1649_v14, %v1499_v13  ;;  %v1391_v23 = vld [vmem:[#allocation8 + $0x1a0] sm:$0xf] }
  0x65   :  { %v1332_v39 = vor.u32 %v1607_v32, %v1331_v31  ;;  %v1488_v32 = vor.u32 %v1646_v28, %v1487_v27 }
  0x66   :  { %958 = vmatpush.bf16.msra.mxu0 %v1184_v26  ;;  %971 = vmatpush.bf16.msra.mxu1 %v1280_v29  ;;  %v1344_v26 = vor.u32 %v1610_v16, %v1343_v15  ;;  %v1235_v29 = vld [vmem:[#allocation8 + $0x68] sm:$0xf]  ;;  %v1200_v15 = vor.u32 %v1574_v6, %v1199_v5 }
  0x68   :  { %984 = vmatpush.bf16.msra.mxu2 %v1376_v38  ;;  %997 = vmatpush.bf16.msra.mxu3 %v1472_v41  ;;  %v1236_v38 = vor.u32 %v1583_v30, %v1235_v29  ;;  %v1535_v41 = vld [vmem:[#allocation8 + $0x2c0] sm:$0xf] }
  0xa6   :  { %v200_v45 = vpop.f32.mrf.mxu0  ;;  %v213_v46 = vpop.f32.mrf.mxu1 }
  0xa7   :  { %v201_v48 = vadd.f32 %v200_v45, %v114_v43  ;;  %v214_v49 = vadd.f32 %v213_v46, %v115_v44  ;;  %v1223_v43 = vld [vmem:[#allocation8 + $0x50] sm:$0xf]  ;;  %v1580_v44 = vld [vmem:[#allocation8 + $0x58] sm:$0xf0] }
  0xa8   :  { %v1319_v45 = vld [vmem:[#allocation8 + $0x110] sm:$0xf]  ;;  %v1604_v46 = vld [vmem:[#allocation8 + $0x118] sm:$0xf0] }
  0xa9   :  { %v243_v53 = vmax.f32 %v201_v48, 0.0  ;;  %v244_v54 = vmax.f32 %v214_v49, 0.0  ;;  %v1536_v48 = vor.u32 %v1658_v42, %v1535_v41  ;;  %v1427_v49 = vld [vmem:[#allocation8 + $0x1e8] sm:$0xf] }
  0xaa   :  { %v1428_v59 = vor.u32 %v1631_v50, %v1427_v49 }
  0xab   :  { %v1901_v61 = vpack.c.bf16 %v243_v53, %v243_v53  ;;  %v1903_v62 = vpack.c.bf16 %v244_v54, %v244_v54  ;;  %v1224_v53 = vor.u32 %v1580_v44, %v1223_v43  ;;  %v1320_v54 = vor.u32 %v1604_v46, %v1319_v45 }
  0xad   :  { %907 = vmatmul.bf16.vlgmr.msrb.gmra.mxu0 %v1901_v61  ;;  %920 = vmatmul.bf16.vlgmr.msrb.gmra.mxu1 %v1903_v62 }
  0xae   :  { %v226_v1 = vpop.f32.mrf.mxu2  ;;  %v239_v2 = vpop.f32.mrf.mxu3  ;;  %1003 = vmatpush.bf16.msrb.mxu0 %v1272_v57  ;;  %1016 = vmatpush.bf16.msrb.mxu1 %v1368_v58  ;;  %v1307_v57 = vld [vmem:[#allocation8 + $0xf8] sm:$0xf]  ;;  %v1601_v58 = vld [vmem:[#allocation8 + $0x100] sm:$0xf0] }
  0xaf   :  { %v227_v7 = vadd.f32 %v226_v1, %v116_v55  ;;  %v240_v8 = vadd.f32 %v239_v2, %v117_v56  ;;  %v202_v9 = vpop.f32.mrf.mxu0  ;;  %v215_v10 = vpop.f32.mrf.mxu1  ;;  %v1211_v55 = vld [vmem:[#allocation8 + $0x38] sm:$0xf]  ;;  %v1577_v56 = vld [vmem:[#allocation8 + $0x40] sm:$0xf0]  ;;  %v1511_v1 = vld [vmem:[#allocation8 + $0x290] sm:$0xf]  ;;  %v1308_v4 = vor.u32 %v1601_v58, %v1307_v57 }
  0xb0   :  { %v1652_v2 = vld [vmem:[#allocation8 + $0x298] sm:$0xf0]  ;;  %v1416_v9 = vor.u32 %v1628_v0, %v1415_v63 }
  0xb1   :  { %v245_v17 = vmax.f32 %v227_v7, 0.0  ;;  %v246_v18 = vmax.f32 %v240_v8, 0.0  ;;  %v1295_v7 = vld [vmem:[#allocation8 + $0xe0] sm:$0xf]  ;;  %v1598_v8 = vld [vmem:[#allocation8 + $0xe8] sm:$0xf0]  ;;  %v1512_v10 = vor.u32 %v1652_v2, %v1511_v1 }
  0xb2   :  { %1004 = vmatpush.bf16.msrb.mxu0 %v1260_v3  ;;  %1017 = vmatpush.bf16.msrb.mxu1 %v1356_v11  ;;  %v1212_v3 = vor.u32 %v1577_v56, %v1211_v55  ;;  %v1403_v11 = vld [vmem:[#allocation8 + $0x1b8] sm:$0xf]  ;;  %v1296_v16 = vor.u32 %v1598_v8, %v1295_v7  ;;  %v1063_v1 = vld [vmem:[%s1939_s6] sm:$0xff] }
  0xb3   :  { %v1907_v24 = vpack.c.bf16 %v245_v17, %v245_v17  ;;  %v1909_v25 = vpack.c.bf16 %v246_v18, %v246_v18  ;;  %v1187_v17 = vld [vmem:[#allocation8 + $0x8] sm:$0xf]  ;;  %v1571_v18 = vld [vmem:[#allocation8 + $0x10] sm:$0xf0]  ;;  %1066 = vperm.xlu0 %1676, %v1063_v1  }
  0xb4   :  { %v1188_v29 = vor.u32 %v1571_v18, %v1187_v17 }
  0xb5   :  { %933 = vmatmul.bf16.vlgmr.msrb.gmra.mxu2 %v1907_v24  ;;  %946 = vmatmul.bf16.vlgmr.msrb.gmra.mxu3 %v1909_v25 }
  0xb6   :  { %v228_v33 = vpop.f32.mrf.mxu2  ;;  %v241_v34 = vpop.f32.mrf.mxu3  ;;  %1029 = vmatpush.bf16.msrb.mxu2 %v1464_v19  ;;  %1042 = vmatpush.bf16.msrb.mxu3 %v1560_v20  ;;  %v1283_v19 = vld [vmem:[#allocation8 + $0xc8] sm:$0xf]  ;;  %v1595_v20 = vld [vmem:[#allocation8 + $0xd0] sm:$0xf0] }
  0xb7   :  { %1005 = vmatpush.bf16.msrb.mxu0 %v1248_v21  ;;  %1018 = vmatpush.bf16.msrb.mxu1 %v1344_v26  ;;  %v1404_v21 = vor.u32 %v1625_v12, %v1403_v11  ;;  %v1622_v26 = vld [vmem:[#allocation8 + $0x1a8] sm:$0xf0]  ;;  %v1284_v30 = vor.u32 %v1595_v20, %v1283_v19  ;;  %v1379_v33 = vld [vmem:[#allocation8 + $0x188] sm:$0xf]  ;;  %v1619_v34 = vld [vmem:[#allocation8 + $0x190] sm:$0xf0] }
  0xb8   :  { %v1392_v31 = vor.u32 %v1622_v26, %v1391_v23  ;;  %v1380_v37 = vor.u32 %v1619_v34, %v1379_v33 }
  0xba   :  { %1030 = vmatpush.bf16.msrb.mxu2 %v1452_v35  ;;  %1043 = vmatpush.bf16.msrb.mxu3 %v1548_v36  ;;  %v1475_v35 = vld [vmem:[#allocation8 + $0x248] sm:$0xf]  ;;  %v1643_v36 = vld [vmem:[#allocation8 + $0x250] sm:$0xf0] }
  0xbb   :  { %1006 = vmatpush.bf16.msrb.mxu0 %v1236_v38  ;;  %1019 = vmatpush.bf16.msrb.mxu1 %v1332_v39  ;;  %v1476_v38 = vor.u32 %v1643_v36, %v1475_v35  ;;  %v379_v39 = vld [vmem:[#allocation10] sm:$0x7] }
  0xbc   :  { %v381_v42 = vperm.slane %v379_v39, 0  ;;  %v382_v52 = vperm.slane %v379_v39, 1  ;;  %v383_v8 = vperm.slane %v379_v39, 2 }
  0xbd   :  { %959 = vmatmul.bf16.vlgmr.msra.gmra.mxu0 %v1901_v61  ;;  %972 = vmatmul.bf16.vlgmr.msra.gmra.mxu1 %v1903_v62 }
  0xbe   :  { %1031 = vmatpush.bf16.msrb.mxu2 %v1440_v47  ;;  %1044 = vmatpush.bf16.msrb.mxu3 %v1536_v48 }
  0xbf   :  { %1007 = vmatpush.bf16.msrb.mxu0 %v1224_v53  ;;  %1020 = vmatpush.bf16.msrb.mxu1 %v1320_v54 }
  0xc2   :  { %1032 = vmatpush.bf16.msrb.mxu2 %v1428_v59  ;;  %1045 = vmatpush.bf16.msrb.mxu3 %v1524_v60 }
  0xc3   :  { %1008 = vmatpush.bf16.msrb.mxu0 %v1212_v3  ;;  %1021 = vmatpush.bf16.msrb.mxu1 %v1308_v4 }
  0xc5   :  { %985 = vmatmul.bf16.vlgmr.msra.gmra.mxu2 %v1907_v24  ;;  %998 = vmatmul.bf16.vlgmr.msra.gmra.mxu3 %v1909_v25 }
  0xc6   :  { %1033 = vmatpush.bf16.msrb.mxu2 %v1416_v9  ;;  %1046 = vmatpush.bf16.msrb.mxu3 %v1512_v10 }
  0xc7   :  { %1009 = vmatpush.bf16.msrb.mxu0 %v1200_v15  ;;  %1022 = vmatpush.bf16.msrb.mxu1 %v1296_v16 }
  0xca   :  { %1034 = vmatpush.bf16.msrb.mxu2 %v1404_v21  ;;  %1047 = vmatpush.bf16.msrb.mxu3 %v1500_v22  ;;  %v1059_v22 = vld [vmem:[%s1938_s5 + $0x8] sm:$0xf] }
  0xcb   :  { %1010 = vmatpush.bf16.msrb.mxu0 %v1188_v29  ;;  %1023 = vmatpush.bf16.msrb.mxu1 %v1284_v30  ;;  %v1073_v28 = vunpack.c.l.b16 %v1059_v22 }
  0xcd   :  { %v1076_v29 = vpack.c.b16 %v1073_v28, %v1073_v28 }
  0xce   :  { %1035 = vmatpush.bf16.msrb.mxu2 %v1392_v31  ;;  %1048 = vmatpush.bf16.msrb.mxu3 %v1488_v32 }
  0xcf   :  { %1011 = vmatmul.bf16.vlgmr.msrb.gmra.mxu0 %v1901_v61  ;;  %1024 = vmatmul.bf16.vlgmr.msrb.gmra.mxu1 %v1903_v62 }
  0xd2   :  { %1036 = vmatpush.bf16.msrb.mxu2 %v1380_v37  ;;  %1049 = vmatpush.bf16.msrb.mxu3 %v1476_v38 }
  0xd5   :  { %1037 = vmatmul.bf16.vlgmr.msrb.gmra.mxu2 %v1907_v24  ;;  %1050 = vmatmul.bf16.vlgmr.msrb.gmra.mxu3 %v1909_v25  ;;  %v1058_v24 = vld [vmem:[%s1938_s5] sm:$0xff] }
  0xd6   :  { %v1071_v55 = vunpack.c.l.b16 %v1058_v24  ;;  %v1072_v11 = vunpack.c.h.b16 %v1058_v24 }
  0xd8   :  { %v1074_v59 = vpack.c.b16 %v1071_v55, %v1071_v55  ;;  %v1075_v15 = vpack.c.b16 %v1072_v11, %v1072_v11 }
 0x125   :  { %v1067_v34 = vpop.permute.xlu0 %1066 }
 0x12a   :  { %v908_v40 = vpop.f32.mrf.mxu0  ;;  %v921_v41 = vpop.f32.mrf.mxu1 }
 0x12b   :  { %v909_v43 = vadd.f32 %v908_v40, %v381_v42 }
 0x12d   :  { %v922_v46 = vadd.f32 %v921_v41, %v909_v43 }
 0x132   :  { %v910_v44 = vpop.f32.mrf.mxu0  ;;  %v923_v45 = vpop.f32.mrf.mxu1 }
 0x138   :  { %v934_v47 = vpop.f32.mrf.mxu2  ;;  %v947_v48 = vpop.f32.mrf.mxu3 }
 0x139   :  { %v935_v49 = vadd.f32 %v934_v47, %v922_v46 }
 0x13a   :  { %v960_v50 = vpop.f32.mrf.mxu0  ;;  %v973_v62 = vpop.f32.mrf.mxu1 }
 0x13b   :  { %v948_v61 = vadd.f32 %v947_v48, %v935_v49  ;;  %v961_v56 = vadd.f32 %v960_v50, %v382_v52 }
 0x13d   :  { %v1055_v51 = vmax.f32 %v948_v61, 0.0  ;;  %v974_v60 = vadd.f32 %v973_v62, %v961_v56 }
 0x13f   :  { %v1060_v25 = vpack.c.bf16 %v1055_v51, %v1055_v51 }
 0x140   :  { %v936_v53 = vpop.f32.mrf.mxu2  ;;  %v949_v54 = vpop.f32.mrf.mxu3 }
 0x141   :  { %1087 = vmatpush.bf16.xpose.msra.mxu0 %v1060_v25 }
 0x142   :  { %v962_v57 = vpop.f32.mrf.mxu0  ;;  %v975_v58 = vpop.f32.mrf.mxu1 }
 0x148   :  { %v986_v63 = vpop.f32.mrf.mxu2  ;;  %v999_v0 = vpop.f32.mrf.mxu3  ;;  %1088 = vmatmul.bf16.vlgmr.msra.gmra.mxu0 %v1074_v59 }
 0x149   :  { %v987_v2 = vadd.f32 %v986_v63, %v974_v60 }
 0x14b   :  { %v1000_v3 = vadd.f32 %v999_v0, %v987_v2 }
 0x14c   :  { %v1012_v4 = vpop.f32.mrf.mxu0  ;;  %v1025_v5 = vpop.f32.mrf.mxu1 }
 0x14d   :  { %v1056_v6 = vmax.f32 %v1000_v3, 0.0  ;;  %v1013_v12 = vadd.f32 %v1012_v4, %v383_v8 }
 0x14f   :  { %v1061_v7 = vpack.c.bf16 %v1056_v6, %v1056_v6  ;;  %v1026_v16 = vadd.f32 %v1025_v5, %v1013_v12 }
 0x150   :  { %v988_v9 = vpop.f32.mrf.mxu2  ;;  %v1001_v10 = vpop.f32.mrf.mxu3 }
 0x151   :  { %1100 = vmatpush.bf16.xpose.msra.mxu1 %v1061_v7 }
 0x154   :  { %v1014_v13 = vpop.f32.mrf.mxu0  ;;  %v1027_v14 = vpop.f32.mrf.mxu1 }
 0x158   :  { %v1038_v17 = vpop.f32.mrf.mxu2  ;;  %v1051_v18 = vpop.f32.mrf.mxu3  ;;  %1101 = vmatmul.bf16.vlgmr.msra.gmra.mxu1 %v1075_v15 }
 0x159   :  { %v1039_v19 = vadd.f32 %v1038_v17, %v1026_v16 }
 0x15b   :  { %v1052_v20 = vadd.f32 %v1051_v18, %v1039_v19 }
 0x15d   :  { %v1057_v21 = vmax.f32 %v1052_v20, 0.0 }
 0x15f   :  { %v1062_v23 = vpack.c.bf16 %v1057_v21, %v1057_v21 }
 0x160   :  { %v1040_v26 = vpop.f32.mrf.mxu2  ;;  %v1053_v27 = vpop.f32.mrf.mxu3 }
 0x161   :  { %1113 = vmatpush.bf16.xpose.msra.mxu2 %v1062_v23 }
 0x168   :  { %1114 = vmatmul.bf16.vlgmr.msra.gmra.mxu2 %v1076_v29 }
 0x1c5   :  { %v1089_v30 = vpop.f32.mrf.mxu0 }
 0x1c6   :  { %v1090_v35 = vadd.f32 %v1089_v30, %v1067_v34 }
 0x1cd   :  { %v1091_v31 = vpop.f32.mrf.mxu0 }
 0x1d5   :  { %v1102_v32 = vpop.f32.mrf.mxu1 }
 0x1d6   :  { %v1103_v36 = vadd.f32 %v1102_v32, %v1090_v35 }
 0x1dd   :  { %v1104_v33 = vpop.f32.mrf.mxu1 }
 0x1eb   :  { %v1115_v37 = vpop.f32.mrf.mxu2 }
 0x1ec   :  { %v1116_v38 = vadd.f32 %v1115_v37, %v1103_v36 }
 0x1ee   :  { %1677 = vtanh.f32 %v1116_v38 }
 0x1f3   :  { %v1117_v39 = vpop.f32.mrf.mxu2 }
 0x1f4   :  { %v1678_v40 = vpop.eup %1677 }
 0x1f5   :  { %1121 = vst.msk [vmem:[#allocation11] sm:$0xff] %vm1120_vm2, %v1678_v40 }
 0x1f6   :  { %1132 = dma.vmem_to_hbm [thread:$0]  %s1128_s8, 128, %s1130_s10, [#allocation4]  }
 0x1f7   :  { %1829 = dma.done.wait [#allocation4], 128  }
 0x1f8   :  { %1830 = vsyncadd [#allocation4], 4294967168 }
 0x1f9   :  { %1137 = vsyncpa [#allocation3], 1 }
 0x1fa   :  { %1138 = vsyncpa [#allocation6], 1 }
 0x1fb   :  { %1139 = vsyncpa [#allocation9], 1 }
 0x1fc   :  { %1140 = vsyncpa [#allocation4], 1 }

</bundles_post_ra>
